<compile_context>
chip_gen: v5e
topology: v5e:2x2
jax: 0.10.0
libtpu: 0.0.40
codegen_flags: <defaults>
</compile_context>

<pallas_src>
import functools

import numpy as np
import jax
import jax.numpy as jnp
from jax.experimental import pallas as pl
from jax.experimental.pallas import tpu as pltpu


def _round_up(x, m):
    return -(-x // m) * m


# ----------------------------------------------------------------------------
# Generation-aware device info (safe fallbacks if the query is unavailable).
# ----------------------------------------------------------------------------
_DEVICE_VMEM = None


def _device_vmem_bytes():
    global _DEVICE_VMEM
    if _DEVICE_VMEM is None:
        try:
            info = pltpu.get_tpu_info()
            _DEVICE_VMEM = int(getattr(info, "vmem_capacity_bytes", 64 * 2**20))
        except Exception:
            _DEVICE_VMEM = 64 * 2**20  # conservative (v7x-sized) fallback
    return _DEVICE_VMEM


def _default_tile_cap():
    # Larger time tiles amortize the ~0.35 us per-grid-step overhead and the
    # Toeplitz prologue; keep the cap generation aware (v7x: 64 MiB VMEM/TC).
    return 2048 if _device_vmem_bytes() >= 96 * 2**20 else 1024


# ----------------------------------------------------------------------------
# Deterministic filter-bank construction (parameter setup = plain numpy glue).
# TODO(synk): mngs uses its own FIR designer; a deterministic windowed-sinc
# design with the same band layout / shapes is used here instead.
# ----------------------------------------------------------------------------
def _windowed_sinc_bandpass(low_hz, high_hz, fs, numtaps):
    n = np.arange(numtaps) - (numtaps - 1) / 2.0

    def lowpass(fc):
        return 2.0 * fc / fs * np.sinc(2.0 * fc / fs * n)

    h = lowpass(high_hz) - lowpass(low_hz)
    h = h * np.hamming(numtaps)
    return h.astype(np.float32)


def build_bandpass_filters(sig_len, fs, pha_mids, amp_mids, cycle):
    nyq = fs / 2.0
    pha_lows, pha_highs = pha_mids - pha_mids / 4.0, pha_mids + pha_mids / 4.0
    amp_lows, amp_highs = amp_mids - amp_mids / 8.0, amp_mids + amp_mids / 8.0
    lows = np.concatenate([pha_lows, amp_lows])
    highs = np.clip(np.concatenate([pha_highs, amp_highs]), 0.1, nyq - 1e-3)

    numtaps = int(cycle * fs / float(lows.min()))
    numtaps = min(numtaps, sig_len - 1)
    if numtaps % 2 == 0:
        numtaps -= 1
    assert numtaps >= 3
    filt = np.stack(
        [_windowed_sinc_bandpass(l, h, fs, numtaps) for l, h in zip(lows, highs)]
    )
    return filt  # (n_filters, numtaps) float32


# ----------------------------------------------------------------------------
# Pallas kernel: per (batch*channel row, time tile), build a bf16 im2col patch
# from a Toeplitz base and run one MXU matmul over the whole filter bank.
# ----------------------------------------------------------------------------
def _bandpass_conv_kernel(x_cur_ref, x_nxt_ref, w_ref, o_ref, mwide_ref, patch_ref):
    # x_cur_ref: (1, 1, T_tile) bf16   extended-signal window [j*T_tile, (j+1)*T_tile)
    # x_nxt_ref: (1, 1, T_tile) bf16   next window           [(j+1)*T_tile, (j+2)*T_tile)
    # w_ref:     (F_pad, K_pad) bf16   filter bank (taps >= n_taps, rows >= n_filt are 0)
    # o_ref:     (1, F_pad, T_tile)    band-passed outputs for this (row, tile)
    # mwide_ref: (16, T_tile + K_pad) bf16  Toeplitz base: mwide[r, t] = xw[r + t]
    # patch_ref: (K_pad, T_tile) bf16       im2col matrix:  patch[k, t] = xw[k + t]
    k_pad, t_tile = patch_ref.shape
    t_wide = mwide_ref.shape[1]
    n_groups = k_pad // 16

    # Local window of the extended signal (already bf16: the f32->bf16 cast is
    # hoisted out of the kernel entirely).  2*T_tile samples cover every tap
    # because the wrapper enforces T_tile >= K_pad + 16.
    xw = jnp.concatenate([x_cur_ref[0], x_nxt_ref[0]], axis=-1)  # (1, 2*T_tile)

    # Toeplitz base: build all 16 rows as one value (the per-row lane shifts run
    # on the XLU) and commit with a single full, unmasked store instead of 16
    # masked single-row stores.
    base = jnp.concatenate([xw[:, r : r + t_wide] for r in range(16)], axis=0)

    # Patch group 0 is exactly the first T_tile columns of the base: write it
    # directly instead of round-tripping through mwide.
    patch_ref[0:16, :] = base[:, :t_tile]

    if n_groups > 1:
        mwide_ref[...] = base
        # Remaining groups: every write is a full bf16 sublane tile:
        #   patch[16*g + r, t] = xw[16*g + r + t] = mwide[r, t + 16*g]
        for g in range(1, n_groups):
            b0 = 16 * g
            patch_ref[b0 : b0 + 16, :] = mwide_ref[:, b0 : b0 + t_tile]

    # Whole filter bank in one MXU matmul: bf16 operands, f32 accumulation.
    # Padded tap rows (k >= n_taps) hold duplicated signal data and are only
    # correct because the corresponding weight columns are exactly zero.
    o_ref[0] = jnp.dot(
        w_ref[...], patch_ref[...], preferred_element_type=jnp.float32
    ).astype(o_ref.dtype)


def _batched_bandpass_conv(x_ext_pad, w_pad, *, t_tile, n_t, out_dtype):
    bc, _, total_len = x_ext_pad.shape
    assert total_len == (n_t + 1) * t_tile
    f_pad, k_pad = w_pad.shape
    t_pad = n_t * t_tile
    out_dtype = jnp.dtype(out_dtype)
    out_bytes = out_dtype.itemsize

    # VMEM budget: im2col + Toeplitz scratch + double-buffered I/O blocks,
    # clamped to the physical per-core VMEM of this generation (64 MiB on v7x,
    # 128 MiB on v5e/v6e) with headroom for compiler-internal scratch.
    needed = (
        k_pad * t_tile * 2                  # im2col patch (bf16)
        + 16 * (t_tile + k_pad) * 2         # Toeplitz base (bf16)
        + 2 * 2 * t_tile * 2                # two x views, double-buffered (bf16)
        + 2 * f_pad * k_pad * 2             # filter bank (constant block index)
        + 2 * f_pad * t_tile * out_bytes    # output, double-buffered
    )
    device_cap = _device_vmem_bytes() - 16 * 2**20
    vmem_limit = int(
        max(min(device_cap, max(2 * needed, 24 * 2**20)), needed + 2 * 2**20)
    )

    return pl.pallas_call(
        _bandpass_conv_kernel,
        out_shape=jax.ShapeDtypeStruct((bc, f_pad, t_pad), out_dtype),
        grid_spec=pltpu.PrefetchScalarGridSpec(
            num_scalar_prefetch=0,
            grid=(bc, n_t),
            in_specs=[
                pl.BlockSpec((1, 1, t_tile), lambda i, j: (i, 0, j)),      # tile j
                pl.BlockSpec((1, 1, t_tile), lambda i, j: (i, 0, j + 1)),  # tile j+1
                # Constant block index -> Pallas only DMAs the weights once.
                pl.BlockSpec((f_pad, k_pad), lambda i, j: (0, 0)),
            ],
            out_specs=pl.BlockSpec((1, f_pad, t_tile), lambda i, j: (i, 0, j)),
            scratch_shapes=[
                pltpu.VMEM((16, t_tile + k_pad), jnp.bfloat16),  # Toeplitz base
                pltpu.VMEM((k_pad, t_tile), jnp.bfloat16),       # im2col patch
            ],
        ),
        compiler_params=pltpu.CompilerParams(
            dimension_semantics=("parallel", "parallel"),
            vmem_limit_bytes=vmem_limit,
        ),
    )(x_ext_pad, x_ext_pad, w_pad)


@functools.partial(
    jax.jit,
    static_argnames=("t_tile", "n_t", "n_filt", "ext", "seq_len", "edge", "out_dtype"),
)
def _bandpass_forward(x, w_pad, *, t_tile, n_t, n_filt, ext, seq_len, edge, out_dtype):
    b, c, _ = x.shape
    f_pad, _ = w_pad.shape

    # Cast once to bf16 (MXU operand dtype) before extension: no per-step casts
    # inside the kernel and half the input DMA traffic.
    xb = x.astype(jnp.bfloat16)
    head = jnp.flip(xb[..., :ext], axis=-1)
    tail = jnp.flip(xb[..., -ext:], axis=-1)
    x_ext = jnp.concatenate([head, xb, tail], axis=-1)

    total = (n_t + 1) * t_tile  # kernel reads tile j and tile j+1
    x_ext = jnp.pad(x_ext, ((0, 0), (0, 0), (0, total - x_ext.shape[-1])))
    x_ext = x_ext.reshape(b * c, 1, total)

    out = _batched_bandpass_conv(
        x_ext, w_pad, t_tile=t_tile, n_t=n_t, out_dtype=out_dtype
    )
    out = out.reshape(b, c, f_pad, n_t * t_tile)
    # Single fused trim: padded filters + padded time + requested edges in one
    # slice (a no-op copy when t_tile divides seq_len, f_pad == n_filt, edge == 0).
    return out[:, :, :n_filt, edge : seq_len - edge]


# ----------------------------------------------------------------------------
# Module wrapper reproducing DifferentiableBandPassFilter.forward semantics.
# ----------------------------------------------------------------------------
class DifferentiableBandPassFilterPallas:
    def __init__(self, sig_len, fs, pha_low_hz=2, pha_high_hz=20, pha_n_bands=30,
                 amp_low_hz=80, amp_high_hz=160, amp_n_bands=50, cycle=3,
                 fp16=False, time_tile=None):
        nyq = fs / 2.0
        pha_high_hz = float(np.clip(pha_high_hz, 0.1, nyq - 1))
        pha_low_hz = float(np.clip(pha_low_hz, 0.1, pha_high_hz - 1))
        amp_high_hz = float(np.clip(amp_high_hz, 0.1, nyq - 1))
        amp_low_hz = float(np.clip(amp_low_hz, 0.1, amp_high_hz - 1))
        assert pha_low_hz < pha_high_hz < nyq
        assert amp_low_hz < amp_high_hz < nyq

        self.sig_len, self.fs, self.cycle, self.fp16 = sig_len, fs, cycle, fp16
        self.time_tile = time_tile
        self.pha_low_hz, self.pha_high_hz = pha_low_hz, pha_high_hz
        self.amp_low_hz, self.amp_high_hz = amp_low_hz, amp_high_hz
        # "learnable" band centres in the torch module -> deterministic init here.
        # TODO(synk): no autograd through the band centres in this JAX port.
        self.pha_mids = np.linspace(pha_low_hz, pha_high_hz, pha_n_bands).astype(np.float32)
        self.amp_mids = np.linspace(amp_low_hz, amp_high_hz, amp_n_bands).astype(np.float32)
        self._w_cache = None
        self.kernels = None
        self._device_filterbank()  # also populates self.kernels

    def _device_filterbank(self):
        """bf16 device filter bank, taps padded to a 16 multiple and filter rows
        padded to a sublane multiple; cached until the band centres change."""
        pha = np.clip(self.pha_mids, self.pha_low_hz, self.pha_high_hz).astype(np.float32)
        amp = np.clip(self.amp_mids, self.amp_low_hz, self.amp_high_hz).astype(np.float32)
        key = (pha.tobytes(), amp.tobytes())
        if self._w_cache is None or self._w_cache[0] != key:
            kernels = build_bandpass_filters(self.sig_len, self.fs, pha, amp, self.cycle)
            n_filt, n_taps = kernels.shape
            k_pad = _round_up(n_taps, 16)            # bf16 sublane-tile multiple
            f_mult = 16 if self.fp16 else 8          # unmasked output stores
            f_pad = _round_up(n_filt, f_mult)
            w_pad = np.zeros((f_pad, k_pad), np.float32)
            w_pad[:n_filt, :n_taps] = kernels
            # Padded tap columns / filter rows MUST stay exactly zero: padded
            # im2col rows hold real (duplicated) signal data.
            assert not np.any(w_pad[:, n_taps:]) and not np.any(w_pad[n_filt:, :])
            self.kernels = kernels
            self._w_cache = (key, jnp.asarray(w_pad, dtype=jnp.bfloat16),
                             n_taps, k_pad, n_filt, f_pad)
        _, w_dev, n_taps, k_pad, n_filt, f_pad = self._w_cache
        return w_dev, n_taps, k_pad, n_filt, f_pad

    def _pick_time_tile(self, seq_len, k_pad, bc):
        min_tile = _round_up(k_pad + 16, 128)
        if self.time_tile is not None:
            return max(_round_up(self.time_tile, 128), min_tile)
        cap = max(_default_tile_cap(), min_tile)
        # Prefer the largest tile <= cap that divides seq_len exactly (skips the
        # post-kernel trim copy); on a single-row grid prefer an even tile count
        # so both v7x TensorCores get work.
        divisors = [c for c in range(min_tile, cap + 1, 128) if seq_len % c == 0]
        if divisors:
            if bc == 1:
                even = [c for c in divisors if (seq_len // c) % 2 == 0]
                if even:
                    return max(even)
            return max(divisors)
        return max(min(_round_up(seq_len, 128), cap), min_tile)

    def __call__(self, x, t=None, edge_len=0):
        # TODO(synk): torch fp16 produces float16; on TPU the fp16 flag maps to a
        # bf16 output (f32 accumulation kept) which halves output HBM traffic.
        w_pad, n_taps, k_pad, n_filt, _ = self._device_filterbank()
        ext = n_taps // 2

        x = jnp.asarray(x)
        if x.ndim == 2:  # ensure_3d
            x = x[:, None, :]
        b, c, seq_len = x.shape
        edge = seq_len // 8 if edge_len == "auto" else int(edge_len)

        t_tile = self._pick_time_tile(seq_len, k_pad, b * c)
        n_t = -(-seq_len // t_tile)

        out = _bandpass_forward(
            x, w_pad,
            t_tile=t_tile, n_t=n_t, n_filt=n_filt, ext=ext,
            seq_len=seq_len, edge=edge,
            out_dtype="bfloat16" if self.fp16 else "float32",
        )
        out_len = seq_len - 2 * edge if edge > 0 else seq_len
        assert out.shape == (b, c, n_filt, out_len), out.shape
        if t is None:
            return out
        t = jnp.asarray(t)
        if edge > 0:
            t = t[..., edge:-edge]
        return out, t


# ----------------------------------------------------------------------------
# Pure-numpy reference (same semantics as the torch forward with edge_len=0).
# ----------------------------------------------------------------------------
def _reference_forward(x, kernels):
    x = np.asarray(x, np.float32)
    k = kernels.shape[-1]
    ext = k // 2
    xe = np.concatenate(
        [x[..., :ext][..., ::-1], x, x[..., -ext:][..., ::-1]], axis=-1
    )
    t_len = x.shape[-1]
    idx = np.arange(t_len)[:, None] + np.arange(k)[None, :]
    patches = xe[..., idx]  # (B, C, T, K)
    return np.einsum("bctk,fk->bcft", patches, kernels)


if __name__ == "__main__":
    B, C, T = 2, 4, 512
    fs = 64
    # time_tile=256 -> two time tiles per row, exercising the tiled grid path.
    model = DifferentiableBandPassFilterPallas(
        sig_len=T, fs=fs,
        pha_low_hz=2, pha_high_hz=8, pha_n_bands=4,
        amp_low_hz=16, amp_high_hz=28, amp_n_bands=4,
        cycle=3, time_tile=256,
    )

    x = jax.random.normal(jax.random.PRNGKey(0), (B, C, T), dtype=jnp.float32)

    y = jax.block_until_ready(model(x, edge_len=0))
    n_filt = model.kernels.shape[0]
    assert y.shape == (B, C, n_filt, T), y.shape
    assert y.dtype == jnp.float32

    ref = _reference_forward(np.asarray(x), model.kernels)
    # bf16 MXU operands with f32 accumulation -> loosened (but still tight) tol.
    np.testing.assert_allclose(np.asarray(y, np.float32), ref, rtol=2e-2, atol=2e-2)

    # fp16 path: bf16 output halves the dominant HBM output writeback; the
    # matmul accumulation stays f32.
    model16 = DifferentiableBandPassFilterPallas(
        sig_len=T, fs=fs,
        pha_low_hz=2, pha_high_hz=8, pha_n_bands=4,
        amp_low_hz=16, amp_high_hz=28, amp_n_bands=4,
        cycle=3, fp16=True, time_tile=256,
    )
    y16 = jax.block_until_ready(model16(x, edge_len=0))
    assert y16.shape == (B, C, n_filt, T), y16.shape
    assert y16.dtype == jnp.bfloat16
    np.testing.assert_allclose(np.asarray(y16, np.float32), ref, rtol=5e-2, atol=5e-2)

    print("KERNEL_OK")
</pallas_src>

<mosaic_0001>
module attributes {stable_mosaic.version = 11 : i64} {
  func.func @_bandpass_conv_kernel(%arg0: i32, %arg1: i32, %arg2: memref<1x1x256xbf16, #tpu.memory_space<vmem>>, %arg3: memref<1x1x256xbf16, #tpu.memory_space<vmem>>, %arg4: memref<8x128xbf16, #tpu.memory_space<vmem>>, %arg5: memref<1x8x256xf32, #tpu.memory_space<vmem>>, %arg6: memref<16x384xbf16, #tpu.memory_space<vmem>>, %arg7: memref<128x256xbf16, #tpu.memory_space<vmem>>) attributes {dimension_semantics = [#tpu.dimension_semantics<parallel>, #tpu.dimension_semantics<parallel>], iteration_bounds = array<i64: 8, 2>, scalar_prefetch = 0 : i64, scratch_operands = 2 : i64, tpu.core_type = #tpu.core_type<tc>, window_params = [{transform_indices = @transform_0, window_bounds = array<i64: 1, 1, 256>}, {transform_indices = @transform_1, window_bounds = array<i64: 1, 1, 256>}, {pipeline_mode = #tpu.pipeline_mode<synchronous>, transform_indices = @transform_2, window_bounds = array<i64: 8, 128>}, {transform_indices = @transform_3, window_bounds = array<i64: 1, 8, 256>}]} {
    %c0 = arith.constant 0 : index
    %c0_0 = arith.constant 0 : index
    %c0_1 = arith.constant 0 : index
    %0 = vector.load %arg2[%c0, %c0_0, %c0_1] : memref<1x1x256xbf16, #tpu.memory_space<vmem>>, vector<1x1x256xbf16>
    %1 = vector.shape_cast %0 : vector<1x1x256xbf16> to vector<1x256xbf16>
    %c0_2 = arith.constant 0 : index
    %c0_3 = arith.constant 0 : index
    %c0_4 = arith.constant 0 : index
    %2 = vector.load %arg3[%c0_2, %c0_3, %c0_4] : memref<1x1x256xbf16, #tpu.memory_space<vmem>>, vector<1x1x256xbf16>
    %3 = vector.shape_cast %2 : vector<1x1x256xbf16> to vector<1x256xbf16>
    %4 = tpu.concatenate %1, %3 in 1 : vector<1x256xbf16>, vector<1x256xbf16> -> vector<1x512xbf16>
    %5 = vector.extract_strided_slice %4 {offsets = [0, 0], sizes = [1, 384], strides = [1, 1]} : vector<1x512xbf16> to vector<1x384xbf16>
    %6 = vector.extract_strided_slice %4 {offsets = [0, 1], sizes = [1, 384], strides = [1, 1]} : vector<1x512xbf16> to vector<1x384xbf16>
    %7 = vector.extract_strided_slice %4 {offsets = [0, 2], sizes = [1, 384], strides = [1, 1]} : vector<1x512xbf16> to vector<1x384xbf16>
    %8 = vector.extract_strided_slice %4 {offsets = [0, 3], sizes = [1, 384], strides = [1, 1]} : vector<1x512xbf16> to vector<1x384xbf16>
    %9 = vector.extract_strided_slice %4 {offsets = [0, 4], sizes = [1, 384], strides = [1, 1]} : vector<1x512xbf16> to vector<1x384xbf16>
    %10 = vector.extract_strided_slice %4 {offsets = [0, 5], sizes = [1, 384], strides = [1, 1]} : vector<1x512xbf16> to vector<1x384xbf16>
    %11 = vector.extract_strided_slice %4 {offsets = [0, 6], sizes = [1, 384], strides = [1, 1]} : vector<1x512xbf16> to vector<1x384xbf16>
    %12 = vector.extract_strided_slice %4 {offsets = [0, 7], sizes = [1, 384], strides = [1, 1]} : vector<1x512xbf16> to vector<1x384xbf16>
    %13 = vector.extract_strided_slice %4 {offsets = [0, 8], sizes = [1, 384], strides = [1, 1]} : vector<1x512xbf16> to vector<1x384xbf16>
    %14 = vector.extract_strided_slice %4 {offsets = [0, 9], sizes = [1, 384], strides = [1, 1]} : vector<1x512xbf16> to vector<1x384xbf16>
    %15 = vector.extract_strided_slice %4 {offsets = [0, 10], sizes = [1, 384], strides = [1, 1]} : vector<1x512xbf16> to vector<1x384xbf16>
    %16 = vector.extract_strided_slice %4 {offsets = [0, 11], sizes = [1, 384], strides = [1, 1]} : vector<1x512xbf16> to vector<1x384xbf16>
    %17 = vector.extract_strided_slice %4 {offsets = [0, 12], sizes = [1, 384], strides = [1, 1]} : vector<1x512xbf16> to vector<1x384xbf16>
    %18 = vector.extract_strided_slice %4 {offsets = [0, 13], sizes = [1, 384], strides = [1, 1]} : vector<1x512xbf16> to vector<1x384xbf16>
    %19 = vector.extract_strided_slice %4 {offsets = [0, 14], sizes = [1, 384], strides = [1, 1]} : vector<1x512xbf16> to vector<1x384xbf16>
    %20 = vector.extract_strided_slice %4 {offsets = [0, 15], sizes = [1, 384], strides = [1, 1]} : vector<1x512xbf16> to vector<1x384xbf16>
    %21 = tpu.concatenate %5, %6, %7, %8, %9, %10, %11, %12, %13, %14, %15, %16, %17, %18, %19, %20 in 0 : vector<1x384xbf16>, vector<1x384xbf16>, vector<1x384xbf16>, vector<1x384xbf16>, vector<1x384xbf16>, vector<1x384xbf16>, vector<1x384xbf16>, vector<1x384xbf16>, vector<1x384xbf16>, vector<1x384xbf16>, vector<1x384xbf16>, vector<1x384xbf16>, vector<1x384xbf16>, vector<1x384xbf16>, vector<1x384xbf16>, vector<1x384xbf16> -> vector<16x384xbf16>
    %22 = vector.extract_strided_slice %21 {offsets = [0, 0], sizes = [16, 256], strides = [1, 1]} : vector<16x384xbf16> to vector<16x256xbf16>
    %c0_5 = arith.constant 0 : index
    %c0_6 = arith.constant 0 : index
    %23 = vector.load %arg7[%c0_5, %c0_6] : memref<128x256xbf16, #tpu.memory_space<vmem>>, vector<16x256xbf16>
    tpu.vector_store %arg7[%c0_5, %c0_6], %22 {strides = array<i32>} : memref<128x256xbf16, #tpu.memory_space<vmem>>, vector<16x256xbf16>,
    %c0_7 = arith.constant 0 : index
    %c0_8 = arith.constant 0 : index
    %24 = vector.load %arg6[%c0_7, %c0_8] : memref<16x384xbf16, #tpu.memory_space<vmem>>, vector<16x384xbf16>
    tpu.vector_store %arg6[%c0_7, %c0_8], %21 {strides = array<i32>} : memref<16x384xbf16, #tpu.memory_space<vmem>>, vector<16x384xbf16>,
    %c0_9 = arith.constant 0 : index
    %c16 = arith.constant 16 : index
    %25 = vector.load %arg6[%c0_9, %c16] : memref<16x384xbf16, #tpu.memory_space<vmem>>, vector<16x256xbf16>
    %c16_10 = arith.constant 16 : index
    %c0_11 = arith.constant 0 : index
    %26 = vector.load %arg7[%c16_10, %c0_11] : memref<128x256xbf16, #tpu.memory_space<vmem>>, vector<16x256xbf16>
    tpu.vector_store %arg7[%c16_10, %c0_11], %25 {strides = array<i32>} : memref<128x256xbf16, #tpu.memory_space<vmem>>, vector<16x256xbf16>,
    %c0_12 = arith.constant 0 : index
    %c32 = arith.constant 32 : index
    %27 = vector.load %arg6[%c0_12, %c32] : memref<16x384xbf16, #tpu.memory_space<vmem>>, vector<16x256xbf16>
    %c32_13 = arith.constant 32 : index
    %c0_14 = arith.constant 0 : index
    %28 = vector.load %arg7[%c32_13, %c0_14] : memref<128x256xbf16, #tpu.memory_space<vmem>>, vector<16x256xbf16>
    tpu.vector_store %arg7[%c32_13, %c0_14], %27 {strides = array<i32>} : memref<128x256xbf16, #tpu.memory_space<vmem>>, vector<16x256xbf16>,
    %c0_15 = arith.constant 0 : index
    %c48 = arith.constant 48 : index
    %29 = vector.load %arg6[%c0_15, %c48] : memref<16x384xbf16, #tpu.memory_space<vmem>>, vector<16x256xbf16>
    %c48_16 = arith.constant 48 : index
    %c0_17 = arith.constant 0 : index
    %30 = vector.load %arg7[%c48_16, %c0_17] : memref<128x256xbf16, #tpu.memory_space<vmem>>, vector<16x256xbf16>
    tpu.vector_store %arg7[%c48_16, %c0_17], %29 {strides = array<i32>} : memref<128x256xbf16, #tpu.memory_space<vmem>>, vector<16x256xbf16>,
    %c0_18 = arith.constant 0 : index
    %c64 = arith.constant 64 : index
    %31 = vector.load %arg6[%c0_18, %c64] : memref<16x384xbf16, #tpu.memory_space<vmem>>, vector<16x256xbf16>
    %c64_19 = arith.constant 64 : index
    %c0_20 = arith.constant 0 : index
    %32 = vector.load %arg7[%c64_19, %c0_20] : memref<128x256xbf16, #tpu.memory_space<vmem>>, vector<16x256xbf16>
    tpu.vector_store %arg7[%c64_19, %c0_20], %31 {strides = array<i32>} : memref<128x256xbf16, #tpu.memory_space<vmem>>, vector<16x256xbf16>,
    %c0_21 = arith.constant 0 : index
    %c80 = arith.constant 80 : index
    %33 = vector.load %arg6[%c0_21, %c80] : memref<16x384xbf16, #tpu.memory_space<vmem>>, vector<16x256xbf16>
    %c80_22 = arith.constant 80 : index
    %c0_23 = arith.constant 0 : index
    %34 = vector.load %arg7[%c80_22, %c0_23] : memref<128x256xbf16, #tpu.memory_space<vmem>>, vector<16x256xbf16>
    tpu.vector_store %arg7[%c80_22, %c0_23], %33 {strides = array<i32>} : memref<128x256xbf16, #tpu.memory_space<vmem>>, vector<16x256xbf16>,
    %c0_24 = arith.constant 0 : index
    %c96 = arith.constant 96 : index
    %35 = vector.load %arg6[%c0_24, %c96] : memref<16x384xbf16, #tpu.memory_space<vmem>>, vector<16x256xbf16>
    %c96_25 = arith.constant 96 : index
    %c0_26 = arith.constant 0 : index
    %36 = vector.load %arg7[%c96_25, %c0_26] : memref<128x256xbf16, #tpu.memory_space<vmem>>, vector<16x256xbf16>
    tpu.vector_store %arg7[%c96_25, %c0_26], %35 {strides = array<i32>} : memref<128x256xbf16, #tpu.memory_space<vmem>>, vector<16x256xbf16>,
    %c0_27 = arith.constant 0 : index
    %c112 = arith.constant 112 : index
    %37 = vector.load %arg6[%c0_27, %c112] : memref<16x384xbf16, #tpu.memory_space<vmem>>, vector<16x256xbf16>
    %c112_28 = arith.constant 112 : index
    %c0_29 = arith.constant 0 : index
    %38 = vector.load %arg7[%c112_28, %c0_29] : memref<128x256xbf16, #tpu.memory_space<vmem>>, vector<16x256xbf16>
    tpu.vector_store %arg7[%c112_28, %c0_29], %37 {strides = array<i32>} : memref<128x256xbf16, #tpu.memory_space<vmem>>, vector<16x256xbf16>,
    %c0_30 = arith.constant 0 : index
    %c0_31 = arith.constant 0 : index
    %39 = vector.load %arg4[%c0_30, %c0_31] : memref<8x128xbf16, #tpu.memory_space<vmem>>, vector<8x128xbf16>
    %c0_32 = arith.constant 0 : index
    %c0_33 = arith.constant 0 : index
    %40 = vector.load %arg7[%c0_32, %c0_33] : memref<128x256xbf16, #tpu.memory_space<vmem>>, vector<128x256xbf16>
    %cst = arith.constant dense<0.000000e+00> : vector<8x256xf32>
    %41 = tpu.matmul %39, %40, %cst {dimension_numbers = #tpu.dot_dimension_numbers<[1], [0], [0], [1], [0, 0, 1, 1], [], []>} : vector<8x128xbf16>, vector<128x256xbf16>, vector<8x256xf32> -> vector<8x256xf32>
    %c0_34 = arith.constant 0 : index
    %c0_35 = arith.constant 0 : index
    %c0_36 = arith.constant 0 : index
    %42 = vector.load %arg5[%c0_34, %c0_35, %c0_36] : memref<1x8x256xf32, #tpu.memory_space<vmem>>, vector<1x8x256xf32>
    %43 = vector.shape_cast %42 : vector<1x8x256xf32> to vector<8x256xf32>
    %44 = vector.shape_cast %41 : vector<8x256xf32> to vector<1x8x256xf32>
    tpu.vector_store %arg5[%c0_34, %c0_35, %c0_36], %44 {strides = array<i32>} : memref<1x8x256xf32, #tpu.memory_space<vmem>>, vector<1x8x256xf32>,
    return
  }
  func.func @transform_0(%arg0: i32, %arg1: i32) -> (i32, i32, i32) {
    %c0_i32 = arith.constant 0 : i32
    %c0_i32_0 = arith.constant 0 : i32
    return %arg0, %c0_i32, %arg1 : i32, i32, i32
  }
  func.func @transform_1(%arg0: i32, %arg1: i32) -> (i32, i32, i32) {
    %c1_i32 = arith.constant 1 : i32
    %0 = arith.addi %arg1, %c1_i32 : i32
    %c0_i32 = arith.constant 0 : i32
    %c0_i32_0 = arith.constant 0 : i32
    return %arg0, %c0_i32, %0 : i32, i32, i32
  }
  func.func @transform_2(%arg0: i32, %arg1: i32) -> (i32, i32) {
    %c0_i32 = arith.constant 0 : i32
    %c0_i32_0 = arith.constant 0 : i32
    %c0_i32_1 = arith.constant 0 : i32
    return %c0_i32, %c0_i32_0 : i32, i32
  }
  func.func @transform_3(%arg0: i32, %arg1: i32) -> (i32, i32, i32) {
    %c0_i32 = arith.constant 0 : i32
    %c0_i32_0 = arith.constant 0 : i32
    return %arg0, %c0_i32, %arg1 : i32, i32, i32
  }
}

</mosaic_0001>

<bundles_post_ra>
// kernel: _bandpass_forward.1
= control target key start
LH: loop header
LB: loop body
LE: loop exit
PB: predicated region body
PF: predicated region fallthrough
CT: control target
= control target key end

     0   :  { %8 = vsyncpa [#allocation5], 0  ;;  %s1957_s0 = inlined_call_operand.vmem [shape: bf16[8,1,768], index: 0, kind: input, shape index: {}, may-alias: {0,1}]   ;;  %s1958_s1 = inlined_call_operand.vmem [shape: bf16[8,1,768], index: 1, kind: input, shape index: {}, may-alias: {0,1}]   ;;  %s1959_s2 = inlined_call_operand.vmem [shape: bf16[8,128], index: 2, kind: input, shape index: {}]   ;;  %s1960_s3 = inlined_call_operand.hbm [shape: f32[8,8,512], index: 3, kind: output, shape index: {}]  }
   0x1   :  { %10 = vsyncpa [#allocation5 + $0x1], 0  ;;  %s1530_s12 = smov 0   ;;  %s1532_s13 = smov 0  }
   0x2   :  { %s1534_s14 = smov 0   ;;  %s1536_s15 = smov 0  }
   0x3   :  { %s1538_s16 = smov 0   ;;  %s1540_s17 = smov 0  }
   0x4   :  { %s1542_s18 = smov 0   ;;  %s1544_s19 = smov 0  }
   0x5 LB: > { %s1122_s20 = sadd.s32 4294967295, %s1486_s19   ;;  %s1123_s21 = sadd.s32 4294967294, %s1486_s19   ;;  %s1486_s19 = sphi %s1544_s19, %s16_s19   ;;  %s1482_s18 = sphi %s1542_s18, %s1985_s18   ;;  %s1478_s17 = sphi %s1540_s17, %s1984_s17   ;;  %s1474_s16 = sphi %s1538_s16, %s1983_s16   ;;  %s1470_s15 = sphi %s1536_s15, %s1982_s15   ;;  %s1466_s14 = sphi %s1534_s14, %s1981_s14   ;;  %s1462_s13 = sphi %s1532_s13, %s1980_s13   ;;  %s1458_s12 = sphi %s1530_s12, %s1979_s12  }
   0x6   : > { %s25_s22 = sadd.s32 1, %s1478_s17  ;;  %s28_s23 = sadd.s32 1, %s1482_s18 }
   0x7   : > { %p26_p0 = scmp.ge.s32.totalorder %s25_s22, 2  ;;  %p126_p1 = scmp.ne.s32.totalorder %s1466_s14, %s1462_s13 }
   0x8   : > { %p127_p2 = scmp.eq.s32.totalorder %s1122_s20, 15  ;;  %p132_p5 = scmp.ne.s32.totalorder %s1462_s13, %s1458_s12 }
   0x9   : > { %s1987_s22 = smov (%p26_p0, %s25_s22), 0  ;;  %s1989_s23 = smov (!%p26_p0, %s28_s23), %s1482_s18 }
   0xa   : > { %s112_s24 = ssub.s32 %s1478_s17, %s1987_s22  ;;  %p1581_p3 = por %p127_p2, %p126_p1 }
   0xb   : > { %p30_p4 = scmp.ge.s32.totalorder %s1989_s23, 8  ;;  %p133_p6 = scmp.eq.s32.totalorder %s1123_s21, 15 }
   0xc   : > { %p1126_p7 = scmp.ge.s32.totalorder %s1486_s19, 1  ;;  %p180_p9 = scmp.lt.s32.totalorder %s1486_s19, 17 }
   0xd   : > { %s1991_s23 = smov (%p30_p4, %s1989_s23), 0  ;;  %p1590_p8 = por %p133_p6, %p132_p5 }
   0xe   : > { %s111_s27 = ssub.s32 %s1482_s18, %s1991_s23  ;;  %s116_s28 = sadd.s32 1, %s1466_s14 }
   0xf   : > { %s113_s29 = sor.u32 %s112_s24, %s111_s27  ;;  %p181_p10 = pnand %p1126_p7, %p180_p9 }
  0x10   : > { %p114_p11 = scmp.eq.s32.totalorder %s113_s29, 0  ;;  %s1602_s4 = sshll.u32 (!%p181_p10), %s1470_s15, 1 }
  0x11   : > { %184 = sbr.rel (%p181_p10) target bundleno = 616 (0x268), region = 32  ;;  %p217_p12 = scmp.lt.s32.totalorder (!%p181_p10), %s1474_s16, 7 }
  0x12   : > { %s1599_s30 = scalar_select %p114_p11, %s1466_s14, %s116_s28  }
  0x13   : > { %p219_p13 = scmp.lt.s32.totalorder (!%p181_p10), %s1602_s4, 5  ;;  %s1201_s5 = sadd.s32 (!%p181_p10), 2, %s1602_s4 }
  0x14   : > { %p229_p0 = scmp.lt.s32.totalorder (!%p181_p10), %s1201_s5, 5  ;;  %s1488_s28 = smov (!%p181_p10), 126  }
  0x15   : > { %s1489_s29 = smov (!%p181_p10), 124   ;;  %s1495_s10 = smov (!%p181_p10), 120  }
  0x16   : > { %s218_s6 = scalar_select %p217_p12, %s1474_s16, 7  ;;  %vm289_vm0 = vcmask 1031168   ;;  %vm522_vm1 = vcmask 1040384   ;;  %vm523_vm2 = vsmask.f32 256  ;;  %vm270_vm3 = vcmask 1039360  }
  0x17   : > { %s220_s7 = scalar_select %p219_p13, %s1602_s4, 5  ;;  %vm1703_vm4 = vmand %vm522_vm1, %vm523_vm2  ;;  %vm324_vm5 = vcmask 1014784   ;;  %vm541_vm6 = vcmask 1041408   ;;  %vm542_vm7 = vsmask.f32 1280  ;;  %vm305_vm8 = vcmask 1022976  }
  0x18   : > { %s1218_s8 = smul.u32 6, %s218_s6  ;;  %s1993_s5 = smov (!%p229_p0, %s1201_s5), 5  ;;  %vm1715_vm9 = vmand %vm541_vm6, %vm542_vm7  ;;  %vm560_vm10 = vcmask 1042432   ;;  %vm561_vm11 = vsmask.f32 2304  ;;  %vm340_vm12 = vcmask 1006592  }
  0x19   : > { %s1491_s6 = smov 125   ;;  %s1496_s11 = smov 119   ;;  %vm1740_vm13 = vmand %vm560_vm10, %vm561_vm11  ;;  %vm359_vm14 = vcmask 998400   ;;  %vm375_vm15 = vcmask 990208   ;;  %vm394_vm2 = vcmask 982016   ;;  %vm429_vm7 = vcmask 965632  }
  0x1a   : > { %s222_s9 = sadd.s32 %s1218_s8, %s220_s7  ;;  %s232_s15 = sadd.s32 %s1218_s8, %s1993_s5  ;;  %vm464_vm11 = vcmask 949248  }
  0x1b   : > { %s223_s20 = scalar_lea.vmem %s1957_s0, %s222_s9  ;;  %s233_s27 = scalar_lea.vmem %s1958_s1, %s232_s15 }
  0x1c   : > { %v237_v0 = vld [vmem:[%s223_s20] sm:$0x3]  ;;  %s1490_s5 = smov 127   ;;  %s1492_s7 = smov 123  }
  0x1d   : > { %240 = vst [vmem:[#allocation1] ss:$9 sm:$0xff] %v237_v0  ;;  %v238_v1 = vld [vmem:[%s233_s27] sm:$0x3]  ;;  %s1493_s8 = smov 122   ;;  %s1494_s9 = smov 121  }
  0x1e   : > { %s1497_s20 = smov 118   ;;  %s1498_s15 = smov 117  }
  0x1f   : > { %s1499_s21 = smov 116   ;;  %s1500_s24 = smov 115  }
  0x20   : > { %s1501_s27 = smov 114  }
  0x24   : > { %v1615_v2 = vld [vmem:[#allocation1] sm:$0xff]  ;;  %v1617_v3 = vld [vmem:[#allocation1 + $0x9] sm:$0xff] }
  0x25   : > { %v277_v4 = vrot.slane %v1615_v2, 7  ;;  %248 = vst [vmem:[#allocation1] ss:$9 sm:$0xff] %v238_v1  ;;  %v1621_v5 = vshll.u32 %v1615_v2, 16  ;;  %v1624_v6 = vshll.u32 %v1617_v3, 16  ;;  %v312_v7 = vrot.slane %v1615_v2, 6 }
  0x26   : > { %v278_v9 = vrot.slane %v1617_v3, 7  ;;  %v313_v11 = vrot.slane %v1617_v3, 6  ;;  %v347_v31 = vrot.slane %v1615_v2, 5  ;;  %v348_v35 = vrot.slane %v1617_v3, 5 }
  0x27   : > { %281 = vrot.lane.b32.xlu1 %v277_v4, %s1488_s28  ;;  %v1312_v8 = vpack.i.bf16 %v1624_v6, %v1621_v5  ;;  %316 = vrot.lane.b32.xlu2 %v312_v7, %s1489_s29  ;;  %v293_v14 = vrot.slane %v1621_v5, 7  ;;  %v294_v15 = vrot.slane %v1624_v6, 7  ;;  %v328_v28 = vrot.slane %v1621_v5, 6 }
  0x28   : > { %v329_v29 = vrot.slane %v1624_v6, 6  ;;  %v363_v38 = vrot.slane %v1621_v5, 5  ;;  %v364_v39 = vrot.slane %v1624_v6, 5  ;;  %v382_v41 = vrot.slane %v1615_v2, 4 }
  0x29   : > { %1313 = vrot.lane.b32.xlu0 %v1312_v8, %s1490_s5  ;;  %v1317_v20 = vpack.i.bf16 %v294_v15, %v293_v14  ;;  %v383_v45 = vrot.slane %v1617_v3, 4  ;;  %v398_v48 = vrot.slane %v1621_v5, 4  ;;  %v399_v49 = vrot.slane %v1624_v6, 4 }
  0x2a   : > { %v1327_v32 = vpack.i.bf16 %v329_v29, %v328_v28  ;;  %v1342_v42 = vpack.i.bf16 %v364_v39, %v363_v38  ;;  %v417_v51 = vrot.slane %v1615_v2, 3  ;;  %v418_v55 = vrot.slane %v1617_v3, 3 }
  0x2b   : > { %v1352_v52 = vpack.i.bf16 %v399_v49, %v398_v48  ;;  %v433_v58 = vrot.slane %v1621_v5, 3  ;;  %v434_v59 = vrot.slane %v1624_v6, 3  ;;  %v452_v61 = vrot.slane %v1615_v2, 2 }
  0x2c   : > { %v1632_v10 = vld [vmem:[#allocation1] sm:$0xff]  ;;  %v1636_v13 = vld [vmem:[#allocation1 + $0x9] sm:$0xff]  ;;  %v453_v1 = vrot.slane %v1617_v3, 2  ;;  %v468_v8 = vrot.slane %v1621_v5, 2  ;;  %v487_v14 = vrot.slane %v1615_v2, 1 }
  0x2d   : > { %v279_v12 = vrot.slane %v1632_v10, 7  ;;  %v314_v16 = vrot.slane %v1632_v10, 6  ;;  %v1643_v17 = vshll.u32 %v1632_v10, 16  ;;  %v1646_v18 = vshll.u32 %v1636_v13, 16 }
  0x2e   : > { %v280_v19 = vrot.slane %v1636_v13, 7  ;;  %v315_v24 = vrot.slane %v1636_v13, 6  ;;  %v349_v33 = vrot.slane %v1632_v10, 5  ;;  %v350_v34 = vrot.slane %v1636_v13, 5 }
  0x2f   : > { %283 = vrot.lane.b32.xlu1 %v278_v9, %s1488_s28  ;;  %285 = vrot.lane.b32.xlu2 %v279_v12, %s1488_s28  ;;  %v295_v21 = vrot.slane %v1643_v17, 7  ;;  %v296_v22 = vrot.slane %v1646_v18, 7  ;;  %v1322_v25 = vpack.i.bf16 %v1646_v18, %v1643_v17  ;;  %v330_v26 = vrot.slane %v1643_v17, 6 }
  0x30   : > { %v331_v27 = vrot.slane %v1646_v18, 6  ;;  %v365_v36 = vrot.slane %v1643_v17, 5  ;;  %v366_v37 = vrot.slane %v1646_v18, 5  ;;  %v384_v43 = vrot.slane %v1632_v10, 4 }
  0x31   : > { %318 = vrot.lane.b32.xlu0 %v313_v11, %s1489_s29  ;;  %v1332_v23 = vpack.i.bf16 %v296_v22, %v295_v21  ;;  %v385_v44 = vrot.slane %v1636_v13, 4  ;;  %v400_v46 = vrot.slane %v1643_v17, 4  ;;  %v401_v47 = vrot.slane %v1646_v18, 4 }
  0x32   : > { %v1337_v30 = vpack.i.bf16 %v331_v27, %v330_v26  ;;  %v1347_v40 = vpack.i.bf16 %v366_v37, %v365_v36  ;;  %v419_v53 = vrot.slane %v1632_v10, 3  ;;  %v420_v54 = vrot.slane %v1636_v13, 3 }
  0x33   : > { %v1357_v50 = vpack.i.bf16 %v401_v47, %v400_v46  ;;  %v435_v56 = vrot.slane %v1643_v17, 3  ;;  %v436_v57 = vrot.slane %v1646_v18, 3  ;;  %v1362_v62 = vpack.i.bf16 %v434_v59, %v433_v58 }
  0x34   : > { %v454_v63 = vrot.slane %v1632_v10, 2  ;;  %v455_v0 = vrot.slane %v1636_v13, 2  ;;  %v470_v4 = vrot.slane %v1643_v17, 2  ;;  %v471_v7 = vrot.slane %v1646_v18, 2 }
  0x35   : > { %v1367_v60 = vpack.i.bf16 %v436_v57, %v435_v56  ;;  %v469_v9 = vrot.slane %v1624_v6, 2  ;;  %v488_v21 = vrot.slane %v1617_v3, 1  ;;  %v505_v22 = vrot.slane %v1643_v17, 1 }
  0x36   : > { %v1377_v12 = vpack.i.bf16 %v471_v7, %v470_v4 }
  0x37   : > { %320 = vrot.lane.b32.xlu1 %v314_v16, %s1489_s29  ;;  %287 = vrot.lane.b32.xlu2 %v280_v19, %s1488_s28  ;;  %v1372_v15 = vpack.i.bf16 %v469_v9, %v468_v8  ;;  %v489_v19 = vrot.slane %v1632_v10, 1  ;;  %s1502_s28 = smov 113  }
  0x39   : > { %1318 = vrot.lane.b32.xlu0 %v1317_v20, %s1491_s6  ;;  %v490_v20 = vrot.slane %v1636_v13, 1 }
  0x3f   : > { %1333 = vrot.lane.b32.xlu1 %v1332_v23, %s1491_s6  ;;  %322 = vrot.lane.b32.xlu2 %v315_v24, %s1489_s29  ;;  %v506_v23 = vrot.slane %v1646_v18, 1  ;;  %v503_v24 = vrot.slane %v1621_v5, 1  ;;  %s1503_s29 = smov 16   ;;  %s1505_s6 = smov 48  }
  0x41   : > { %1323 = vrot.lane.b32.xlu0 %v1322_v25, %s1490_s5  ;;  %v504_v25 = vrot.slane %v1624_v6, 1  ;;  %v1387_v27 = vpack.i.bf16 %v506_v23, %v505_v22  ;;  %s1504_s5 = smov 32  }
  0x43   : > { %v1382_v29 = vpack.i.bf16 %v504_v25, %v503_v24 }
  0x47   : > { %1338 = vrot.lane.b32.xlu1 %v1337_v30, %s1492_s7  ;;  %351 = vrot.lane.b32.xlu2 %v347_v31, %s1493_s8 }
  0x49   : > { %1328 = vrot.lane.b32.xlu0 %v1327_v32, %s1492_s7  ;;  %s1506_s7 = smov 64  }
  0x4f   : > { %355 = vrot.lane.b32.xlu1 %v349_v33, %s1493_s8  ;;  %357 = vrot.lane.b32.xlu2 %v350_v34, %s1493_s8 }
  0x51   : > { %353 = vrot.lane.b32.xlu0 %v348_v35, %s1493_s8  ;;  %s1507_s8 = smov 80  }
  0x57   : > { %1348 = vrot.lane.b32.xlu1 %v1347_v40, %s1494_s9  ;;  %386 = vrot.lane.b32.xlu2 %v382_v41, %s1495_s10 }
  0x59   : > { %1343 = vrot.lane.b32.xlu0 %v1342_v42, %s1494_s9  ;;  %s1508_s9 = smov 96  }
  0x5f   : > { %390 = vrot.lane.b32.xlu1 %v384_v43, %s1495_s10  ;;  %392 = vrot.lane.b32.xlu2 %v385_v44, %s1495_s10 }
  0x61   : > { %388 = vrot.lane.b32.xlu0 %v383_v45, %s1495_s10  ;;  %s1509_s10 = smov 112  }
  0x67   : > { %1358 = vrot.lane.b32.xlu1 %v1357_v50, %s1496_s11  ;;  %421 = vrot.lane.b32.xlu2 %v417_v51, %s1497_s20 }
  0x69   : > { %1353 = vrot.lane.b32.xlu0 %v1352_v52, %s1496_s11 }
  0x6f   : > { %425 = vrot.lane.b32.xlu1 %v419_v53, %s1497_s20  ;;  %427 = vrot.lane.b32.xlu2 %v420_v54, %s1497_s20 }
  0x71   : > { %423 = vrot.lane.b32.xlu0 %v418_v55, %s1497_s20 }
  0x77   : > { %1368 = vrot.lane.b32.xlu1 %v1367_v60, %s1498_s15  ;;  %456 = vrot.lane.b32.xlu2 %v452_v61, %s1499_s21 }
  0x79   : > { %1363 = vrot.lane.b32.xlu0 %v1362_v62, %s1498_s15  ;;  %s1196_s15 = sshll.u32 %s1474_s16, 2 }
  0x7f   : > { %460 = vrot.lane.b32.xlu1 %v454_v63, %s1499_s21  ;;  %462 = vrot.lane.b32.xlu2 %v455_v0, %s1499_s21 }
  0x81   : > { %458 = vrot.lane.b32.xlu0 %v453_v1, %s1499_s21  ;;  %v317_v11 = vpop.permute.xlu2 %316  ;;  %s1024_s21 = sadd.s32 %s1196_s15, %s1602_s4  ;;  %s1412_s15 = scalar_lea.hbm %s1960_s3, 256 }
  0x87   : > { %1378 = vrot.lane.b32.xlu1 %v1377_v12, %s1500_s24  ;;  %491 = vrot.lane.b32.xlu2 %v487_v14, %s1501_s27 }
  0x89   : > { %1373 = vrot.lane.b32.xlu0 %v1372_v15, %s1500_s24  ;;  %v286_v16 = vpop.permute.xlu2 %285  ;;  %s213_s24 = sand.u32 1, %s1462_s13  }
  0x8f   : > { %495 = vrot.lane.b32.xlu1 %v489_v19, %s1501_s27  ;;  %497 = vrot.lane.b32.xlu2 %v490_v20, %s1501_s27 }
  0x91   : > { %493 = vrot.lane.b32.xlu0 %v488_v21, %s1501_s27  ;;  %v288_v26 = vpop.permute.xlu2 %287  ;;  %s1197_s27 = sshll.u32 %s1024_s21, 3 }
  0x92   : > { %v292_v28 = vsel %vm289_vm0, %v286_v16, %v288_v26 }
  0x97   : > { %1388 = vrot.lane.b32.xlu1 %v1387_v27, %s1502_s28 }
  0x99   : > { %v282_v13 = vpop.permute.xlu1 %281  ;;  %1383 = vrot.lane.b32.xlu0 %v1382_v29, %s1502_s28  ;;  %v323_v38 = vpop.permute.xlu2 %322  ;;  %s1127_s28 = sshll.u32 %s213_s24, 4 }
  0x9b   : > { %v1314_v17 = vpop.permute.xlu0 %1313 }
  0x9c   : > { %v1316_v18 = vunpack.i.h.bf16 %v1314_v17  ;;  %v1315_v30 = vunpack.i.l.bf16 %v1314_v17 }
  0x9e   : > { %v271_v6 = vsel %vm270_vm3, %v1315_v30, %v1316_v18 }
  0x9f   : > { %v525_v31 = vsel %vm1703_vm4, %v1615_v2, %v271_v6 }
  0xa1   : > { %v284_v32 = vpop.permute.xlu1 %283  ;;  %v352_v45 = vpop.permute.xlu2 %351 }
  0xa2   : > { %v290_v33 = vsel %vm289_vm0, %v282_v13, %v284_v32  ;;  %v291_v34 = vsel %vm289_vm0, %v284_v32, %v286_v16  ;;  %vm579_vm0 = vcmask 1043456  }
  0xa3   : > { %v531_v35 = vsel %vm522_vm1, %v525_v31, %v290_v33  ;;  %v319_v36 = vpop.permute.xlu0 %318 }
  0xa4   : > { %v325_v37 = vsel %vm324_vm5, %v317_v11, %v319_v36 }
  0xa9   : > { %v321_v39 = vpop.permute.xlu1 %320  ;;  %v358_v58 = vpop.permute.xlu2 %357 }
  0xaa   : > { %v326_v40 = vsel %vm324_vm5, %v319_v36, %v321_v39  ;;  %v327_v41 = vsel %vm324_vm5, %v321_v39, %v323_v38  ;;  %vm599_vm5 = vsmask.f32 4352 }
  0xab   : > { %v1319_v42 = vpop.permute.xlu0 %1318 }
  0xac   : > { %v1321_v43 = vunpack.i.h.bf16 %v1319_v42  ;;  %v1320_v44 = vunpack.i.l.bf16 %v1319_v42 }
  0xae   : > { %v306_v46 = vsel %vm305_vm8, %v1320_v44, %v1321_v43 }
  0xaf   : > { %v544_v47 = vsel %vm1715_vm9, %v531_v35, %v306_v46 }
  0xb0   : > { %v550_v48 = vsel %vm541_vm6, %v544_v47, %v325_v37 }
  0xb1   : > { %v1334_v49 = vpop.permute.xlu1 %1333  ;;  %v387_v23 = vpop.permute.xlu2 %386 }
  0xb2   : > { %v1335_v50 = vunpack.i.l.bf16 %v1334_v49  ;;  %v1336_v52 = vunpack.i.h.bf16 %v1334_v49 }
  0xb3   : > { %v1324_v51 = vpop.permute.xlu0 %1323 }
  0xb4   : > { %v307_v53 = vsel %vm305_vm8, %v1321_v43, %v1335_v50  ;;  %v1326_v54 = vunpack.i.h.bf16 %v1324_v51  ;;  %v1325_v55 = vunpack.i.l.bf16 %v1324_v51  ;;  %v308_v61 = vsel %vm305_vm8, %v1335_v50, %v1336_v52 }
  0xb5   : > { %vm445_vm8 = vcmask 957440  }
  0xb6   : > { %v272_v56 = vsel %vm270_vm3, %v1316_v18, %v1325_v55  ;;  %v273_v57 = vsel %vm270_vm3, %v1325_v55, %v1326_v54  ;;  %vm410_vm3 = vcmask 973824  }
  0xb7   : > { %v526_v59 = vsel %vm1703_vm4, %v1617_v3, %v272_v56  ;;  %v527_v60 = vsel %vm1703_vm4, %v1632_v10, %v273_v57  ;;  %vm598_vm4 = vcmask 1044480  }
  0xb8   : > { %v535_v62 = vsel %vm522_vm1, %v526_v59, %v291_v34  ;;  %v539_v63 = vsel %vm522_vm1, %v527_v60, %v292_v28  ;;  %vm580_vm1 = vsmask.f32 3328 }
  0xb9   : > { %v1339_v0 = vpop.permute.xlu1 %1338  ;;  %v546_v1 = vsel %vm1715_vm9, %v539_v63, %v308_v61  ;;  %v545_v3 = vsel %vm1715_vm9, %v535_v62, %v307_v53  ;;  %v393_v30 = vpop.permute.xlu2 %392  ;;  %vm617_vm9 = vcmask 1045504  }
  0xba   : > { %v1341_v4 = vunpack.i.h.bf16 %v1339_v0  ;;  %v1340_v7 = vunpack.i.l.bf16 %v1339_v0  ;;  %v558_v8 = vsel %vm541_vm6, %v546_v1, %v327_v41  ;;  %v554_v9 = vsel %vm541_vm6, %v545_v3, %v326_v40  ;;  %vm1773_vm6 = vmand %vm579_vm0, %vm580_vm1 }
  0xbb   : > { %v1329_v11 = vpop.permute.xlu0 %1328  ;;  %vm499_vm1 = vcmask 932864  }
  0xbc   : > { %v343_v12 = vsel %vm340_vm12, %v1340_v7, %v1341_v4  ;;  %v1331_v14 = vunpack.i.h.bf16 %v1329_v11  ;;  %v1330_v15 = vunpack.i.l.bf16 %v1329_v11 }
  0xbd   : > { %v565_v16 = vsel %vm1740_vm13, %v558_v8, %v343_v12 }
  0xbe   : > { %v341_v19 = vsel %vm340_vm12, %v1330_v15, %v1331_v14  ;;  %v342_v20 = vsel %vm340_vm12, %v1331_v14, %v1340_v7  ;;  %vm1792_vm12 = vmand %vm598_vm4, %vm599_vm5  ;;  %vm656_vm5 = vsmask.f32 7424 }
  0xbf   : > { %v563_v21 = vsel %vm1740_vm13, %v550_v48, %v341_v19  ;;  %v564_v22 = vsel %vm1740_vm13, %v554_v9, %v342_v20  ;;  %vm480_vm13 = vcmask 941056  }
  0xc1   : > { %v356_v24 = vpop.permute.xlu1 %355  ;;  %v1755_v32 = vpop.permute.xlu2 %421 }
  0xc2   : > { %v362_v25 = vsel %vm359_vm14, %v356_v24, %v358_v58 }
  0xc3   : > { %v577_v26 = vsel %vm560_vm10, %v565_v16, %v362_v25  ;;  %v354_v27 = vpop.permute.xlu0 %353 }
  0xc4   : > { %v360_v28 = vsel %vm359_vm14, %v352_v45, %v354_v27  ;;  %v361_v29 = vsel %vm359_vm14, %v354_v27, %v356_v24  ;;  %vm636_vm14 = vcmask 1046528  }
  0xc5   : > { %v569_v13 = vsel %vm560_vm10, %v563_v21, %v360_v28  ;;  %v573_v17 = vsel %vm560_vm10, %v564_v22, %v361_v29  ;;  %vm618_vm10 = vsmask.f32 5376 }
  0xc9   : > { %v1349_v18 = vpop.permute.xlu1 %1348  ;;  %v428_v35 = vpop.permute.xlu2 %427 }
  0xca   : > { %v1351_v43 = vunpack.i.h.bf16 %v1349_v18  ;;  %v1350_v44 = vunpack.i.l.bf16 %v1349_v18 }
  0xcb   : > { %v1344_v5 = vpop.permute.xlu0 %1343 }
  0xcc   : > { %v1346_v45 = vunpack.i.h.bf16 %v1344_v5  ;;  %v1345_v46 = vunpack.i.l.bf16 %v1344_v5  ;;  %v378_v48 = vsel %vm375_vm15, %v1350_v44, %v1351_v43 }
  0xcd   : > { %v584_v59 = vsel %vm1773_vm6, %v577_v26, %v378_v48 }
  0xce   : > { %v376_v52 = vsel %vm375_vm15, %v1345_v46, %v1346_v45  ;;  %v377_v53 = vsel %vm375_vm15, %v1346_v45, %v1350_v44  ;;  %vm637_vm15 = vsmask.f32 6400 }
  0xcf   : > { %v582_v63 = vsel %vm1773_vm6, %v569_v13, %v376_v52  ;;  %v583_v0 = vsel %vm1773_vm6, %v573_v17, %v377_v53  ;;  %vm1848_vm6 = vmand %vm636_vm14, %vm637_vm15 }
  0xd1   : > { %v391_v6 = vpop.permute.xlu1 %390  ;;  %v1757_v38 = vpop.permute.xlu2 %456 }
  0xd2   : > { %v397_v54 = vsel %vm394_vm2, %v391_v6, %v393_v30 }
  0xd3   : > { %v389_v31 = vpop.permute.xlu0 %388  ;;  %v596_v62 = vsel %vm579_vm0, %v584_v59, %v397_v54 }
  0xd4   : > { %v395_v60 = vsel %vm394_vm2, %v387_v23, %v389_v31  ;;  %v396_v61 = vsel %vm394_vm2, %v389_v31, %v391_v6  ;;  %vm1818_vm2 = vmand %vm617_vm9, %vm618_vm10  ;;  %vm821_vm10 = vcmask 392192  }
  0xd5   : > { %v588_v9 = vsel %vm579_vm0, %v582_v63, %v395_v60  ;;  %v592_v11 = vsel %vm579_vm0, %v583_v0, %v396_v61 }
  0xd9   : > { %v1359_v33 = vpop.permute.xlu1 %1358  ;;  %v1765_v42 = vpop.permute.xlu2 %462 }
  0xda   : > { %v1361_v50 = vunpack.i.h.bf16 %v1359_v33  ;;  %v1360_v51 = vunpack.i.l.bf16 %v1359_v33 }
  0xdb   : > { %v1354_v34 = vpop.permute.xlu0 %1353 }
  0xdc   : > { %v1356_v56 = vunpack.i.h.bf16 %v1354_v34  ;;  %v1355_v57 = vunpack.i.l.bf16 %v1354_v34  ;;  %v413_v1 = vsel %vm410_vm3, %v1360_v51, %v1361_v50 }
  0xdd   : > { %v603_v15 = vsel %vm1792_vm12, %v596_v62, %v413_v1 }
  0xde   : > { %v411_v12 = vsel %vm410_vm3, %v1355_v57, %v1356_v56  ;;  %v412_v14 = vsel %vm410_vm3, %v1356_v56, %v1360_v51  ;;  %vm515_vm3 = vcmask 924672  }
  0xdf   : > { %v601_v22 = vsel %vm1792_vm12, %v588_v9, %v411_v12  ;;  %v602_v23 = vsel %vm1792_vm12, %v592_v11, %v412_v14  ;;  %vm763_vm12 = vcmask 654336  }
  0xe1   : > { %v426_v36 = vpop.permute.xlu1 %425  ;;  %v492_v58 = vpop.permute.xlu2 %491 }
  0xe2   : > { %v432_v19 = vsel %vm429_vm7, %v426_v36, %v428_v35 }
  0xe3   : > { %v424_v37 = vpop.permute.xlu0 %423  ;;  %v615_v18 = vsel %vm598_vm4, %v603_v15, %v432_v19 }
  0xe4   : > { %v430_v20 = vsel %vm429_vm7, %v1755_v32, %v424_v37  ;;  %v431_v21 = vsel %vm429_vm7, %v424_v37, %v426_v36 }
  0xe5   : > { %v607_v30 = vsel %vm598_vm4, %v601_v22, %v430_v20  ;;  %v611_v5 = vsel %vm598_vm4, %v602_v23, %v431_v21  ;;  %vm655_vm4 = vcmask 1047552  }
  0xe6   : > { %vm1858_vm7 = vmand %vm655_vm4, %vm656_vm5 }
  0xe9   : > { %v1759_v39 = vpop.permute.xlu1 %1368  ;;  %v498_v34 = vpop.permute.xlu2 %497 }
  0xea   : > { %v1371_v4 = vunpack.i.h.bf16 %v1759_v39  ;;  %v1370_v7 = vunpack.i.l.bf16 %v1759_v39 }
  0xeb   : > { %v1761_v40 = vpop.permute.xlu0 %1363 }
  0xec   : > { %v1366_v10 = vunpack.i.h.bf16 %v1761_v40  ;;  %v1365_v8 = vunpack.i.l.bf16 %v1761_v40  ;;  %v448_v24 = vsel %vm445_vm8, %v1370_v7, %v1371_v4 }
  0xed   : > { %v622_v35 = vsel %vm1818_vm2, %v615_v18, %v448_v24 }
  0xee   : > { %v446_v25 = vsel %vm445_vm8, %v1365_v8, %v1366_v10  ;;  %v447_v6 = vsel %vm445_vm8, %v1366_v10, %v1370_v7  ;;  %vm879_vm8 = vcmask 130048  }
  0xef   : > { %v620_v36 = vsel %vm1818_vm2, %v607_v30, %v446_v25  ;;  %v621_v37 = vsel %vm1818_vm2, %v611_v5, %v447_v6 }
  0xf1   : > { %v1763_v41 = vpop.permute.xlu1 %460 }
  0xf2   : > { %v467_v31 = vsel %vm464_vm11, %v1763_v41, %v1765_v42 }
  0xf3   : > { %v1767_v2 = vpop.permute.xlu0 %458  ;;  %v634_v42 = vsel %vm617_vm9, %v622_v35, %v467_v31 }
  0xf4   : > { %v465_v32 = vsel %vm464_vm11, %v1757_v38, %v1767_v2  ;;  %v466_v33 = vsel %vm464_vm11, %v1767_v2, %v1763_v41  ;;  %vm792_vm11 = vcmask 523264  }
  0xf5   : > { %v626_v2 = vsel %vm617_vm9, %v620_v36, %v465_v32  ;;  %v630_v43 = vsel %vm617_vm9, %v621_v37, %v466_v33  ;;  %vm850_vm9 = vcmask 261120  }
  0xf9   : > { %v1769_v47 = vpop.permute.xlu1 %1378 }
  0xfa   : > { %v1381_v28 = vunpack.i.h.bf16 %v1769_v47  ;;  %v1380_v29 = vunpack.i.l.bf16 %v1769_v47 }
  0xfb   : > { %v1374_v55 = vpop.permute.xlu0 %1373 }
  0xfc   : > { %v1376_v13 = vunpack.i.h.bf16 %v1374_v55  ;;  %v1375_v17 = vunpack.i.l.bf16 %v1374_v55  ;;  %v483_v39 = vsel %vm480_vm13, %v1380_v29, %v1381_v28 }
  0xfd   : > { %v641_v51 = vsel %vm1848_vm6, %v634_v42, %v483_v39 }
  0xfe   : > { %v481_v38 = vsel %vm480_vm13, %v1375_v17, %v1376_v13  ;;  %v482_v40 = vsel %vm480_vm13, %v1376_v13, %v1380_v29  ;;  %vm734_vm13 = vcmask 785408  }
  0xff   : > { %v639_v52 = vsel %vm1848_vm6, %v626_v2, %v481_v38  ;;  %v640_v53 = vsel %vm1848_vm6, %v630_v43, %v482_v40 }
 0x101   : > { %v496_v16 = vpop.permute.xlu1 %495 }
 0x102   : > { %v502_v44 = vsel %vm499_vm1, %v496_v16, %v498_v34 }
 0x103   : > { %v494_v26 = vpop.permute.xlu0 %493  ;;  %v653_v55 = vsel %vm636_vm14, %v641_v51, %v502_v44 }
 0x104   : > { %v500_v46 = vsel %vm499_vm1, %v492_v58, %v494_v26  ;;  %v501_v47 = vsel %vm499_vm1, %v494_v26, %v496_v16 }
 0x105   : > { %v645_v59 = vsel %vm636_vm14, %v639_v52, %v500_v46  ;;  %v649_v60 = vsel %vm636_vm14, %v640_v53, %v501_v47  ;;  %vm705_vm14 = vcmask 916480  }
 0x109   : > { %v1389_v45 = vpop.permute.xlu1 %1388 }
 0x10a   : > { %v1391_v49 = vunpack.i.h.bf16 %v1389_v45  ;;  %v1390_v50 = vunpack.i.l.bf16 %v1389_v45 }
 0x10b   : > { %v1384_v54 = vpop.permute.xlu0 %1383 }
 0x10c   : > { %v518_v56 = vsel %vm515_vm3, %v1390_v50, %v1391_v49  ;;  %v1386_v57 = vunpack.i.h.bf16 %v1384_v54  ;;  %v1385_v58 = vunpack.i.l.bf16 %v1384_v54 }
 0x10d   : > { %v660_v61 = vsel %vm1858_vm7, %v653_v55, %v518_v56 }
 0x10e   : > { %v674_v62 = vunpack.c.l.b16 %v660_v61  ;;  %v675_v63 = vunpack.c.h.b16 %v660_v61  ;;  %v516_v0 = vsel %vm515_vm3, %v1385_v58, %v1386_v57  ;;  %v517_v1 = vsel %vm515_vm3, %v1386_v57, %v1390_v50 }
 0x10f   : > { %v658_v3 = vsel %vm1858_vm7, %v645_v59, %v516_v0  ;;  %v659_v4 = vsel %vm1858_vm7, %v649_v60, %v517_v1 }
 0x110   : > { %v676_v7 = vpack.c.b16 %v674_v62, %v674_v62  ;;  %v677_v10 = vpack.c.b16 %v675_v63, %v675_v63  ;;  %v663_v8 = vunpack.c.l.b16 %v658_v3  ;;  %v664_v9 = vunpack.c.l.b16 %v659_v4 }
 0x111   : > { %v665_v11 = vunpack.c.h.b16 %v658_v3  ;;  %v666_v12 = vunpack.c.h.b16 %v659_v4 }
 0x112   : > { %681 = vst [vmem:[#allocation2 + $0x8] sm:$0xf] %v676_v7  ;;  %v667_v14 = vpack.c.b16 %v664_v9, %v663_v8 }
 0x113   : > { %683 = vst [vmem:[#allocation2 + $0x14] sm:$0xf] %v677_v10  ;;  %v668_v15 = vpack.c.b16 %v666_v12, %v665_v11 }
 0x114   : > { %671 = vst [vmem:[#allocation3] sm:$0xff] %v667_v14  ;;  %866 = vrot.lane.b32.xlu2 %v667_v14, %s1503_s29 }
 0x115   : > { %672 = vst [vmem:[#allocation3 + $0x8] sm:$0xff] %v668_v15  ;;  %870 = vrot.lane.b32.xlu1 %v668_v15, %s1503_s29 }
 0x119   : > { %v859_v16 = vld [vmem:[#allocation2 + $0x8] sm:$0xf] }
 0x11a   : > { %868 = vrot.lane.b32.xlu0 %v859_v16, %s1503_s29  ;;  %v861_v19 = vld [vmem:[#allocation2 + $0x14] sm:$0xf]  ;;  %v830_v20 = vld [vmem:[#allocation2 + $0x8] sm:$0xf] }
 0x11b   : > { %v832_v21 = vld [vmem:[#allocation2 + $0x14] sm:$0xf]  ;;  %v801_v22 = vld [vmem:[#allocation2 + $0x8] sm:$0xf] }
 0x11c   : > { %872 = vrot.lane.b32.xlu2 %v861_v19, %s1503_s29  ;;  %v803_v23 = vld [vmem:[#allocation2 + $0x14] sm:$0xf]  ;;  %v772_v24 = vld [vmem:[#allocation2 + $0x8] sm:$0xf] }
 0x11d   : > { %839 = vrot.lane.b32.xlu1 %v830_v20, %s1504_s5  ;;  %v774_v25 = vld [vmem:[#allocation2 + $0x14] sm:$0xf]  ;;  %v743_v26 = vld [vmem:[#allocation2 + $0x8] sm:$0xf] }
 0x11e   : > { %v745_v27 = vld [vmem:[#allocation2 + $0x14] sm:$0xf]  ;;  %v714_v28 = vld [vmem:[#allocation2 + $0x8] sm:$0xf] }
 0x11f   : > { %v716_v29 = vld [vmem:[#allocation2 + $0x14] sm:$0xf]  ;;  %v685_v13 = vld [vmem:[#allocation2 + $0x8] sm:$0xf] }
 0x120   : > { %v687_v17 = vld [vmem:[#allocation2 + $0x14] sm:$0xf] }
 0x122   : > { %837 = vrot.lane.b32.xlu0 %v667_v14, %s1504_s5 }
 0x124   : > { %841 = vrot.lane.b32.xlu2 %v668_v15, %s1504_s5 }
 0x125   : > { %808 = vrot.lane.b32.xlu1 %v667_v14, %s1505_s6 }
 0x12a   : > { %843 = vrot.lane.b32.xlu0 %v832_v21, %s1504_s5 }
 0x12c   : > { %810 = vrot.lane.b32.xlu2 %v801_v22, %s1505_s6 }
 0x12d   : > { %814 = vrot.lane.b32.xlu1 %v803_v23, %s1505_s6 }
 0x132   : > { %812 = vrot.lane.b32.xlu0 %v668_v15, %s1505_s6  ;;  %s1026_s6 = scalar_lea.hbm %s1960_s3, %s1197_s27 }
 0x134   : > { %779 = vrot.lane.b32.xlu2 %v667_v14, %s1506_s7 }
 0x135   : > { %783 = vrot.lane.b32.xlu1 %v668_v15, %s1506_s7 }
 0x13a   : > { %781 = vrot.lane.b32.xlu0 %v772_v24, %s1506_s7 }
 0x13c   : > { %785 = vrot.lane.b32.xlu2 %v774_v25, %s1506_s7  ;;  %s215_s7 = scalar_lea.vmem [#allocation4], %s1127_s28 }
 0x13d   : > { %752 = vrot.lane.b32.xlu1 %v743_v26, %s1507_s8 }
 0x142   : > { %750 = vrot.lane.b32.xlu0 %v667_v14, %s1507_s8 }
 0x144   : > { %754 = vrot.lane.b32.xlu2 %v668_v15, %s1507_s8 }
 0x145   : > { %721 = vrot.lane.b32.xlu1 %v667_v14, %s1508_s9 }
 0x14a   : > { %756 = vrot.lane.b32.xlu0 %v745_v27, %s1507_s8  ;;  %s1028_s8 = sshll.u32 %s215_s7, 4  ;;  %s1029_s8 = int_to_ptr.vmem [resolvable:$true] %s1028_s8 }
 0x14c   : > { %723 = vrot.lane.b32.xlu2 %v714_v28, %s1508_s9 }
 0x14d   : > { %727 = vrot.lane.b32.xlu1 %v716_v29, %s1508_s9 }
 0x152   : > { %725 = vrot.lane.b32.xlu0 %v668_v15, %s1508_s9  ;;  %s1030_s9 = sshll.u32 %s1026_s6, 4  ;;  %s1031_s9 = int_to_ptr.hbm [resolvable:$true] %s1030_s9 }
 0x153   : > { %s1406_s16 = sshra.s32 %s1031_s9, 4  ;;  %s1407_s16 = int_to_ptr.hbm [resolvable:$true] %s1406_s16 }
 0x154   : > { %692 = vrot.lane.b32.xlu2 %v667_v14, %s1509_s10  ;;  %s1408_s4 = scalar_lea.hbm %s1407_s16, 16  ;;  %p1413_p5 = scmp.lt.s32.totalorder %s1407_s16, %s1960_s3 }
 0x155   : > { %696 = vrot.lane.b32.xlu1 %v668_v15, %s1509_s10  ;;  %p1409_p1 = scmp.ne.s32.totalorder %s1407_s16, %s1408_s4  ;;  %p1414_p6 = scmp.lt.s32.totalorder %s1412_s15, %s1408_s4 }
 0x157   : > { %p1410_p2 = pnand %p1409_p1, %p1581_p3  ;;  %p1415_p7 = por %p1414_p6, %p1413_p5 }
 0x159   : > { %p1411_p4 = pneg %p1410_p2 }
 0x15a   : > { %694 = vrot.lane.b32.xlu0 %v685_v13, %s1509_s10 }
 0x15b   : > { %p1416_p9 = pnand %p1415_p7, %p1411_p4 }
 0x15c   : > { %698 = vrot.lane.b32.xlu2 %v687_v17, %s1509_s10  ;;  %s1013_s10 = scalar_lea.sflag [#allocation5], %s213_s24 }
 0x16e   : > { %v867_v18 = vpop.permute.xlu2 %866 }
 0x16f   : > { %v874_v37 = vrot.slane %v867_v18, 4 }
 0x176   : > { %v873_v30 = vpop.permute.xlu2 %872 }
 0x177   : > { %v877_v31 = vrot.slane %v873_v30, 4 }
 0x17e   : > { %v842_v5 = vpop.permute.xlu2 %841 }
 0x17f   : > { %v847_v59 = vrot.slane %v842_v5, 4 }
 0x186   : > { %v811_v33 = vpop.permute.xlu2 %810 }
 0x187   : > { %v871_v6 = vpop.permute.xlu1 %870  ;;  %v817_v49 = vrot.slane %v811_v33, 4 }
 0x188   : > { %v876_v32 = vrot.slane %v871_v6, 4 }
 0x18a   : > { %v881_v34 = vsel %vm579_vm0, %v876_v32, %v877_v31 }
 0x18b   : > { %v882_v35 = vsel %vm879_vm8, %v871_v6, %v881_v34 }
 0x18c   : > { %v869_v36 = vpop.permute.xlu0 %868  ;;  %886 = vst [vmem:[#allocation3 + $0x78] sm:$0xff] %v882_v35 }
 0x18d   : > { %v875_v39 = vrot.slane %v869_v36, 4 }
 0x18e   : > { %v780_v42 = vpop.permute.xlu2 %779 }
 0x18f   : > { %v878_v38 = vsel %vm579_vm0, %v874_v37, %v875_v39  ;;  %v840_v40 = vpop.permute.xlu1 %839  ;;  %v787_v25 = vrot.slane %v780_v42, 4 }
 0x190   : > { %v880_v41 = vsel %vm879_vm8, %v867_v18, %v878_v38  ;;  %v846_v44 = vrot.slane %v840_v40, 4 }
 0x191   : > { %885 = vst [vmem:[#allocation3 + $0x70] sm:$0xff] %v880_v41 }
 0x193   : > { %v1217_v46 = vld [vmem:[#allocation3 + $0x74] sm:$0xf0]  ;;  %v1190_v47 = vld [vmem:[#allocation3 + $0x78] sm:$0xf0] }
 0x194   : > { %v838_v2 = vpop.permute.xlu0 %837 }
 0x195   : > { %v845_v43 = vrot.slane %v838_v2, 4 }
 0x196   : > { %v786_v61 = vpop.permute.xlu2 %785 }
 0x197   : > { %v849_v45 = vsel %vm579_vm0, %v845_v43, %v846_v44  ;;  %v809_v48 = vpop.permute.xlu1 %808  ;;  %v790_v12 = vrot.slane %v786_v61, 4 }
 0x198   : > { %v851_v50 = vsel %vm850_vm9, %v838_v2, %v849_v45  ;;  %v1188_v51 = vld [vmem:[#allocation3 + $0x70] sm:$0xf]  ;;  %v1216_v52 = vld [vmem:[#allocation3 + $0x74] sm:$0xf]  ;;  %v816_v53 = vrot.slane %v809_v48, 4 }
 0x199   : > { %856 = vst [vmem:[#allocation3 + $0x60] sm:$0xff] %v851_v50  ;;  %v1189_v54 = vor.u32 %v1217_v46, %v1188_v51  ;;  %v1193_v55 = vor.u32 %v1216_v52, %v1190_v47 }
 0x19a   : > { %v820_v56 = vsel %vm579_vm0, %v816_v53, %v817_v49 }
 0x19b   : > { %984 = vmatpush.bf16.msra.mxu0 %v1189_v54  ;;  %997 = vmatpush.bf16.msra.mxu1 %v1193_v55  ;;  %v822_v57 = vsel %vm821_vm10, %v809_v48, %v820_v56 }
 0x19c   : > { %v844_v58 = vpop.permute.xlu0 %843  ;;  %827 = vst [vmem:[#allocation3 + $0x50] sm:$0xff] %v822_v57 }
 0x19d   : > { %v848_v60 = vrot.slane %v844_v58, 4 }
 0x19e   : > { %v1889_v10 = vpop.permute.xlu2 %754 }
 0x19f   : > { %v852_v62 = vsel %vm579_vm0, %v847_v59, %v848_v60  ;;  %v815_v63 = vpop.permute.xlu1 %814  ;;  %v760_v49 = vrot.slane %v1889_v10, 4 }
 0x1a0   : > { %v853_v0 = vsel %vm850_vm9, %v842_v5, %v852_v62  ;;  %v819_v4 = vrot.slane %v815_v63, 4  ;;  %v1180_v8 = vld [vmem:[#allocation3 + $0x60] sm:$0xf]  ;;  %v1214_v9 = vld [vmem:[#allocation3 + $0x64] sm:$0xf] }
 0x1a1   : > { %857 = vst [vmem:[#allocation3 + $0x68] sm:$0xff] %v853_v0 }
 0x1a3   : > { %v1172_v28 = vld [vmem:[#allocation3 + $0x50] sm:$0xf]  ;;  %v1212_v18 = vld [vmem:[#allocation3 + $0x54] sm:$0xf] }
 0x1a4   : > { %v813_v1 = vpop.permute.xlu0 %812 }
 0x1a5   : > { %v818_v3 = vrot.slane %v813_v1, 4 }
 0x1a6   : > { %v724_v5 = vpop.permute.xlu2 %723 }
 0x1a7   : > { %v823_v7 = vsel %vm579_vm0, %v818_v3, %v819_v4  ;;  %v784_v11 = vpop.permute.xlu1 %783  ;;  %v730_v38 = vrot.slane %v724_v5, 4 }
 0x1a8   : > { %v824_v14 = vsel %vm821_vm10, %v813_v1, %v823_v7  ;;  %v1215_v15 = vld [vmem:[#allocation3 + $0x64] sm:$0xf0]  ;;  %v1182_v16 = vld [vmem:[#allocation3 + $0x68] sm:$0xf0]  ;;  %v789_v19 = vrot.slane %v784_v11, 4 }
 0x1a9   : > { %828 = vst [vmem:[#allocation3 + $0x58] sm:$0xff] %v824_v14  ;;  %v1181_v20 = vor.u32 %v1215_v15, %v1180_v8  ;;  %v1185_v21 = vor.u32 %v1214_v9, %v1182_v16 }
 0x1aa   : > { %v794_v22 = vsel %vm579_vm0, %v789_v19, %v790_v12 }
 0x1ab   : > { %985 = vmatpush.bf16.msra.mxu0 %v1181_v20  ;;  %998 = vmatpush.bf16.msra.mxu1 %v1185_v21  ;;  %v795_v23 = vsel %vm792_vm11, %v784_v11, %v794_v22 }
 0x1ac   : > { %v782_v24 = vpop.permute.xlu0 %781  ;;  %799 = vst [vmem:[#allocation3 + $0x48] sm:$0xff] %v795_v23 }
 0x1ad   : > { %v788_v26 = vrot.slane %v782_v24, 4 }
 0x1ae   : > { %v693_v46 = vpop.permute.xlu2 %692 }
 0x1af   : > { %v791_v27 = vsel %vm579_vm0, %v787_v25, %v788_v26  ;;  %v753_v29 = vpop.permute.xlu1 %752  ;;  %v700_v11 = vrot.slane %v693_v46, 4 }
 0x1b0   : > { %v793_v13 = vsel %vm792_vm11, %v780_v42, %v791_v27  ;;  %v1213_v17 = vld [vmem:[#allocation3 + $0x54] sm:$0xf0]  ;;  %v1174_v30 = vld [vmem:[#allocation3 + $0x58] sm:$0xf0]  ;;  %v759_v34 = vrot.slane %v753_v29, 4 }
 0x1b1   : > { %798 = vst [vmem:[#allocation3 + $0x40] sm:$0xff] %v793_v13  ;;  %v1173_v6 = vor.u32 %v1213_v17, %v1172_v28  ;;  %v1177_v31 = vor.u32 %v1212_v18, %v1174_v30  ;;  %v1132_v13 = vld [vmem:[#allocation3] sm:$0xf]  ;;  %v1203_v17 = vld [vmem:[#allocation3 + $0x4] sm:$0xf0] }
 0x1b2   : > { %v1202_v18 = vld [vmem:[#allocation3 + $0x4] sm:$0xf]  ;;  %v1134_v30 = vld [vmem:[#allocation3 + $0x8] sm:$0xf0]  ;;  %v1133_v5 = vor.u32 %v1203_v17, %v1132_v13 }
 0x1b3   : > { %986 = vmatpush.bf16.msra.mxu0 %v1173_v6  ;;  %999 = vmatpush.bf16.msra.mxu1 %v1177_v31  ;;  %v1211_v36 = vld [vmem:[#allocation3 + $0x44] sm:$0xf0]  ;;  %v1166_v37 = vld [vmem:[#allocation3 + $0x48] sm:$0xf0]  ;;  %v1137_v6 = vor.u32 %v1202_v18, %v1134_v30  ;;  %v887_v31 = vld [vmem:[%s1959_s2] sm:$0xf] }
 0x1b4   : > { %v751_v32 = vpop.permute.xlu0 %750 }
 0x1b5   : > { %v758_v33 = vrot.slane %v751_v32, 4 }
 0x1b6   : > { %v699_v55 = vpop.permute.xlu2 %698 }
 0x1b7   : > { %v762_v35 = vsel %vm579_vm0, %v758_v33, %v759_v34  ;;  %v722_v39 = vpop.permute.xlu1 %721  ;;  %v703_v62 = vrot.slane %v699_v55, 4 }
 0x1b8   : > { %v764_v40 = vsel %vm763_vm12, %v751_v32, %v762_v35  ;;  %v1164_v41 = vld [vmem:[#allocation3 + $0x40] sm:$0xf]  ;;  %v1210_v42 = vld [vmem:[#allocation3 + $0x44] sm:$0xf]  ;;  %v729_v2 = vrot.slane %v722_v39, 4 }
 0x1b9   : > { %769 = vst [vmem:[#allocation3 + $0x30] sm:$0xff] %v764_v40  ;;  %v1165_v43 = vor.u32 %v1211_v36, %v1164_v41  ;;  %v1169_v44 = vor.u32 %v1210_v42, %v1166_v37 }
 0x1ba   : > { %v733_v45 = vsel %vm579_vm0, %v729_v2, %v730_v38 }
 0x1bb   : > { %987 = vmatpush.bf16.msra.mxu0 %v1165_v43  ;;  %1000 = vmatpush.bf16.msra.mxu1 %v1169_v44  ;;  %v735_v47 = vsel %vm734_vm13, %v722_v39, %v733_v45 }
 0x1bc   : > { %v757_v48 = vpop.permute.xlu0 %756  ;;  %740 = vst [vmem:[#allocation3 + $0x20] sm:$0xff] %v735_v47 }
 0x1bd   : > { %v761_v50 = vrot.slane %v757_v48, 4 }
 0x1bf   : > { %v765_v51 = vsel %vm579_vm0, %v760_v49, %v761_v50  ;;  %v728_v52 = vpop.permute.xlu1 %727 }
 0x1c0   : > { %v766_v53 = vsel %vm763_vm12, %v1889_v10, %v765_v51  ;;  %v732_v57 = vrot.slane %v728_v52, 4  ;;  %v1156_v59 = vld [vmem:[#allocation3 + $0x30] sm:$0xf]  ;;  %v1208_v60 = vld [vmem:[#allocation3 + $0x34] sm:$0xf] }
 0x1c1   : > { %770 = vst [vmem:[#allocation3 + $0x38] sm:$0xff] %v766_v53 }
 0x1c3   : > { %v1148_v15 = vld [vmem:[#allocation3 + $0x20] sm:$0xf]  ;;  %v1206_v20 = vld [vmem:[#allocation3 + $0x24] sm:$0xf] }
 0x1c4   : > { %v726_v54 = vpop.permute.xlu0 %725 }
 0x1c5   : > { %v731_v56 = vrot.slane %v726_v54, 4 }
 0x1c7   : > { %v736_v58 = vsel %vm579_vm0, %v731_v56, %v732_v57  ;;  %v697_v61 = vpop.permute.xlu1 %696 }
 0x1c8   : > { %v737_v63 = vsel %vm734_vm13, %v726_v54, %v736_v58  ;;  %v1209_v0 = vld [vmem:[#allocation3 + $0x34] sm:$0xf0]  ;;  %v1158_v1 = vld [vmem:[#allocation3 + $0x38] sm:$0xf0]  ;;  %v702_v3 = vrot.slane %v697_v61, 4 }
 0x1c9   : > { %741 = vst [vmem:[#allocation3 + $0x28] sm:$0xff] %v737_v63  ;;  %v1157_v4 = vor.u32 %v1209_v0, %v1156_v59  ;;  %v1161_v7 = vor.u32 %v1208_v60, %v1158_v1 }
 0x1ca   : > { %v707_v10 = vsel %vm579_vm0, %v702_v3, %v703_v62 }
 0x1cb   : > { %988 = vmatpush.bf16.msra.mxu0 %v1157_v4  ;;  %1001 = vmatpush.bf16.msra.mxu1 %v1161_v7  ;;  %v708_v8 = vsel %vm705_vm14, %v697_v61, %v707_v10 }
 0x1cc   : > { %v695_v9 = vpop.permute.xlu0 %694  ;;  %712 = vst [vmem:[#allocation3 + $0x18] sm:$0xff] %v708_v8 }
 0x1cd   : > { %v701_v12 = vrot.slane %v695_v9, 4 }
 0x1cf   : > { %v704_v14 = vsel %vm579_vm0, %v700_v11, %v701_v12 }
 0x1d0   : > { %v706_v16 = vsel %vm705_vm14, %v693_v46, %v704_v14  ;;  %v1207_v19 = vld [vmem:[#allocation3 + $0x24] sm:$0xf0]  ;;  %v1150_v21 = vld [vmem:[#allocation3 + $0x28] sm:$0xf0] }
 0x1d1   : > { %711 = vst [vmem:[#allocation3 + $0x10] sm:$0xff] %v706_v16  ;;  %v1149_v22 = vor.u32 %v1207_v19, %v1148_v15  ;;  %v1153_v23 = vor.u32 %v1206_v20, %v1150_v21 }
 0x1d3   : > { %989 = vmatpush.bf16.msra.mxu0 %v1149_v22  ;;  %1002 = vmatpush.bf16.msra.mxu1 %v1153_v23  ;;  %v1205_v24 = vld [vmem:[#allocation3 + $0x14] sm:$0xf0]  ;;  %v1142_v27 = vld [vmem:[#allocation3 + $0x18] sm:$0xf0] }
 0x1d8   : > { %v1140_v25 = vld [vmem:[#allocation3 + $0x10] sm:$0xf]  ;;  %v1204_v26 = vld [vmem:[#allocation3 + $0x14] sm:$0xf] }
 0x1d9   : > { %v1141_v28 = vor.u32 %v1205_v24, %v1140_v25  ;;  %v1145_v29 = vor.u32 %v1204_v26, %v1142_v27 }
 0x1db   : > { %990 = vmatpush.bf16.msra.mxu0 %v1141_v28  ;;  %1003 = vmatpush.bf16.msra.mxu1 %v1145_v29 }
 0x1df   : > { %991 = vmatpush.bf16.msra.mxu0 %v1133_v5  ;;  %1004 = vmatpush.bf16.msra.mxu1 %v1137_v6 }
 0x1e2   : > { %992 = vmatmul.bf16.vlgmr.msra.gmra.mxu0 %v887_v31  ;;  %1005 = vmatmul.bf16.vlgmr.msra.gmra.mxu1 %v887_v31 }
 0x25f   : > { %v993_v32 = vpop.f32.mrf.mxu0  ;;  %v1006_v33 = vpop.f32.mrf.mxu1 }
 0x260   : > { %1010 = vst [vmem:[%s215_s7] sm:$0xff] %v993_v32 }
 0x261   : > { %1011 = vst [vmem:[%s215_s7 + $0x8] sm:$0xff] %v1006_v33 }
 0x262   : > { %1419 = shalt.err (!%p1416_p9)
}
 0x263   : > { %1219 = dma.vmem_to_hbm [thread:$0]  (%p1581_p3), %s1029_s8, 256, %s1031_s9, %s1013_s10  }
 0x267   : > { %v995_v34 = vpop.f32.mrf.mxu0  ;;  %v1008_v35 = vpop.f32.mrf.mxu1 }
 0x268 PF: > { %p1225_p10 = scmp.ge.s32.totalorder %s1486_s19, 2  ;;  %s1042_s24 = sand.u32 1, %s1458_s12  }
 0x269   : > { %s1043_s28 = scalar_lea.sflag [#allocation5], %s1042_s24 }
 0x26a   : > { %p1222_p11 = pnand %p1225_p10, %p1590_p8 }
 0x26c   : > { %p1223_p12 = pneg %p1222_p11 }
 0x26e   : > { %1453 = dma.done.wait (%p1223_p12), %s1043_s28, 256  }
 0x26f   : > { %1455 = vsyncadd (%p1223_p12), %s1043_s28, 4294967040  ;;  %s16_s19 = sadd.s32 1, %s1486_s19   ;;  %s1979_s12 = smov %s1462_s13 }
 0x270   : > { %p13_p13 = scmp.ge.s32.totalorder %s16_s19, 18   ;;  %s1980_s13 = smov %s1466_s14 }
 0x271   : > { %s1981_s14 = smov %s1599_s30  ;;  %s1982_s15 = smov %s1478_s17 }
 0x272   : > { %s1983_s16 = smov %s1482_s18  ;;  %s1984_s17 = smov %s1987_s22 }
 0x273   : > { %s1985_s18 = smov %s1991_s23  ;;  %15 = sbr.rel (!%p13_p13) target bundleno = 5 (0x5), region = 70 }
 0x278   :  { %1049 = vsyncpa [#allocation5], 1 }
 0x279   :  { %1051 = vsyncpa [#allocation5 + $0x1], 1 }

</bundles_post_ra>
